<compile_context>
chip_gen: v6e
topology: v6e:2x2x1
jax: 0.10.0
libtpu: 0.0.40
codegen_flags: <defaults>
</compile_context>

<pallas_src>
import functools

import jax
import jax.numpy as jnp
from jax.experimental import pallas as pl
from jax.experimental.pallas import tpu as pltpu


def _round_up(x: int, m: int) -> int:
    return ((x + m - 1) // m) * m


def _mlp_planner_kernel(
    xl_ref,   # (TB, 2*n_track) f32 : left boundary, interleaved [x0,y0,x1,y1,...]
    xr_ref,   # (TB, 2*n_track) f32 : right boundary, interleaved
    w1l_ref,  # (2*n_track, 256)    : torch rows 0:2n (left), native order
    w1r_ref,  # (2*n_track, 256)    : torch rows 2n:4n (right), native order
    b1_ref,   # (1, 256) f32
    w2_ref,   # (256, 128)
    b2_ref,   # (1, 128) f32
    w3_ref,   # (128, out_pad)      : zero-padded past 2*n_waypoints
    b3_ref,   # (1, out_pad) f32    : zero-padded
    out_ref,  # (TB, out_pad) f32
    *,
    n_track: int,
    approx_recip: bool,
):
    two_n = 2 * n_track
    inv_n = 1.0 / n_track
    inv_nm1 = 1.0 / (n_track - 1)

    # lane parity mask: even lanes are x-coords, odd lanes are y-coords
    lane = jax.lax.broadcasted_iota(jnp.int32, (1, two_n), 1)
    is_x = (lane % 2) == 0

    def normalize(v):
        # per-(row, coordinate) stats over the n_track points, matching torch:
        # (t - mean) / (std_unbiased + 1e-6).  Exact f32 on VPU/XLU.
        vx = jnp.where(is_x, v, 0.0)
        vy = v - vx
        mx = jnp.sum(vx, axis=-1, keepdims=True) * inv_n        # (TB, 1)
        my = jnp.sum(vy, axis=-1, keepdims=True) * inv_n
        d = v - jnp.where(is_x, mx, my)                          # (TB, 2n)
        dx = jnp.where(is_x, d, 0.0)
        dy = d - dx
        sx = jnp.sqrt(jnp.sum(dx * dx, axis=-1, keepdims=True) * inv_nm1) + 1e-6
        sy = jnp.sqrt(jnp.sum(dy * dy, axis=-1, keepdims=True) * inv_nm1) + 1e-6
        if approx_recip:
            ix = pl.reciprocal(sx, approx=True)   # EUP slot, off the VPU path
            iy = pl.reciprocal(sy, approx=True)
        else:
            ix = 1.0 / sx                          # exact, for tight f32 check
            iy = 1.0 / sy
        return d * jnp.where(is_x, ix, iy)

    xl = normalize(xl_ref[...].astype(jnp.float32))
    xr = normalize(xr_ref[...].astype(jnp.float32))

    # first layer: two K=2*n_track MXU passes (MXU has huge slack; avoids any
    # in-kernel lane concatenate / weight-row permutation)
    h1 = (
        jnp.dot(xl.astype(w1l_ref.dtype), w1l_ref[...],
                preferred_element_type=jnp.float32)
        + jnp.dot(xr.astype(w1r_ref.dtype), w1r_ref[...],
                  preferred_element_type=jnp.float32)
        + b1_ref[...]
    )
    h1 = jnp.maximum(h1, 0.0)        # ReLU (Dropout = identity in eval)

    h2 = (
        jnp.dot(h1.astype(w2_ref.dtype), w2_ref[...],
                preferred_element_type=jnp.float32)
        + b2_ref[...]
    )
    h2 = jnp.maximum(h2, 0.0)

    out_ref[...] = (
        jnp.dot(h2.astype(w3_ref.dtype), w3_ref[...],
                preferred_element_type=jnp.float32)
        + b3_ref[...]
    )


def mlp_planner_forward(track_left, track_right, params, n_waypoints=3, *,
                        compute_dtype=jnp.float32, batch_tile=1024,
                        approx_recip=True):
    """track_left/right: (B, n_track, 2) f32 -> waypoints (B, n_waypoints, 2)."""
    B, n_track, two = track_left.shape
    assert two == 2 and track_right.shape == (B, n_track, 2)
    assert n_track >= 2, "unbiased std requires n_track >= 2"
    two_n = 2 * n_track
    out_dim = 2 * n_waypoints
    out_pad = _round_up(out_dim, 8)   # small slab; masked vst is cheap here

    w1, b1 = params["w1"], params["b1"]
    w2, b2 = params["w2"], params["b2"]
    w3, b3 = params["w3"], params["b3"]

    # ---- weight plumbing (no row permutation; constant-folds under jit) -----
    w1l = w1[:two_n].astype(compute_dtype)                     # (2n, 256)
    w1r = w1[two_n:].astype(compute_dtype)                     # (2n, 256)
    w2c = w2.astype(compute_dtype)                             # (256, 128)
    w3p = jnp.pad(w3, ((0, 0), (0, out_pad - out_dim))).astype(compute_dtype)
    b1r = b1.reshape(1, -1).astype(jnp.float32)
    b2r = b2.reshape(1, -1).astype(jnp.float32)
    b3p = jnp.pad(b3.reshape(1, -1), ((0, 0), (0, out_pad - out_dim))
                  ).astype(jnp.float32)

    # ---- inputs: contiguous reshape only (no transpose/concat HBM pass) -----
    xl = track_left.reshape(B, two_n).astype(jnp.float32)
    xr = track_right.reshape(B, two_n).astype(jnp.float32)

    # ---- batch tiling ---------------------------------------------------------
    batch_tile = max(8, _round_up(batch_tile, 8))
    b_pad8 = _round_up(B, 8)
    tb = min(batch_tile, b_pad8)
    grid = pl.cdiv(b_pad8, tb)
    if grid == 1 and b_pad8 >= 16:
        # keep >= 2 grid steps so v7x's two TensorCores both get work
        tb = _round_up(pl.cdiv(b_pad8, 2), 8)
        grid = pl.cdiv(b_pad8, tb)
    b_pad = grid * tb
    if b_pad != B:
        xl = jnp.pad(xl, ((0, b_pad - B), (0, 0)))
        xr = jnp.pad(xr, ((0, b_pad - B), (0, 0)))

    kernel = functools.partial(
        _mlp_planner_kernel, n_track=n_track, approx_recip=approx_recip)

    const = lambda i: (0, 0)   # weights/biases resident across batch tiles

    out = pl.pallas_call(
        kernel,
        out_shape=jax.ShapeDtypeStruct((b_pad, out_pad), jnp.float32),
        grid_spec=pltpu.PrefetchScalarGridSpec(
            num_scalar_prefetch=0,
            grid=(grid,),
            in_specs=[
                pl.BlockSpec((tb, two_n), lambda i: (i, 0)),
                pl.BlockSpec((tb, two_n), lambda i: (i, 0)),
                pl.BlockSpec(w1l.shape, const),
                pl.BlockSpec(w1r.shape, const),
                pl.BlockSpec(b1r.shape, const),
                pl.BlockSpec(w2c.shape, const),
                pl.BlockSpec(b2r.shape, const),
                pl.BlockSpec(w3p.shape, const),
                pl.BlockSpec(b3p.shape, const),
            ],
            out_specs=pl.BlockSpec((tb, out_pad), lambda i: (i, 0)),
        ),
        compiler_params=pltpu.CompilerParams(
            dimension_semantics=("parallel",),
        ),
    )(xl, xr, w1l, w1r, b1r, w2c, b2r, w3p, b3p)

    return out[:B, :out_dim].reshape(B, n_waypoints, 2)


def _reference_forward(track_left, track_right, params, n_waypoints=3):
    """Pure-JAX replica of the PyTorch forward (eval mode) for validation."""
    def normalize(t):
        mean = jnp.mean(t, axis=1, keepdims=True)
        std = jnp.std(t, axis=1, keepdims=True, ddof=1) + 1e-6
        return (t - mean) / std

    tl = normalize(track_left)
    tr = normalize(track_right)
    x = jnp.concatenate([tl, tr], axis=1).reshape(track_left.shape[0], -1)
    h = jnp.maximum(x @ params["w1"] + params["b1"], 0.0)
    h = jnp.maximum(h @ params["w2"] + params["b2"], 0.0)
    out = h @ params["w3"] + params["b3"]
    return out.reshape(-1, n_waypoints, 2)


def init_params(key, n_track=10, n_waypoints=3):
    """Deterministic synthetic init (uniform +-1/sqrt(fan_in), like torch Linear)."""
    input_dim = n_track * 2 * 2
    output_dim = n_waypoints * 2
    dims = [(input_dim, 256), (256, 128), (128, output_dim)]
    params = {}
    for idx, (fan_in, fan_out) in enumerate(dims, start=1):
        key, kw, kb = jax.random.split(key, 3)
        bound = 1.0 / jnp.sqrt(fan_in)
        params[f"w{idx}"] = jax.random.uniform(
            kw, (fan_in, fan_out), jnp.float32, -bound, bound)
        params[f"b{idx}"] = jax.random.uniform(
            kb, (fan_out,), jnp.float32, -bound, bound)
    return params


if __name__ == "__main__":
    B, n_track, n_waypoints = 2, 10, 3

    key = jax.random.PRNGKey(0)
    k_tl, k_tr, k_p = jax.random.split(key, 3)
    track_left = jax.random.normal(k_tl, (B, n_track, 2), jnp.float32)
    track_right = jax.random.normal(k_tr, (B, n_track, 2), jnp.float32)
    params = init_params(k_p, n_track=n_track, n_waypoints=n_waypoints)

    ref = _reference_forward(track_left, track_right, params, n_waypoints)

    # Strict f32 check against the torch-equivalent reference (exact 1/std).
    out = mlp_planner_forward(track_left, track_right, params, n_waypoints,
                              approx_recip=False)
    out = jax.block_until_ready(out)
    assert out.shape == (B, n_waypoints, 2), out.shape
    assert jnp.allclose(out, ref, atol=1e-4, rtol=1e-4), (
        "Pallas kernel (f32, exact recip) mismatch vs reference")

    # Production default path: approx reciprocal on the EUP (looser tolerance).
    out_a = mlp_planner_forward(track_left, track_right, params, n_waypoints)
    out_a = jax.block_until_ready(out_a)
    assert jnp.allclose(out_a, ref, atol=3e-2, rtol=3e-2), (
        "Pallas kernel (approx recip) mismatch vs reference")

    # bf16 matmul path (native MXU dtype) — loose tolerance.
    out_bf16 = mlp_planner_forward(track_left, track_right, params, n_waypoints,
                                   compute_dtype=jnp.bfloat16)
    out_bf16 = jax.block_until_ready(out_bf16)
    assert jnp.allclose(out_bf16, ref, atol=5e-2, rtol=5e-2), (
        "Pallas kernel (bf16) mismatch vs reference")

    # Multi-step batch grid (grid >= 2, resident weights, ragged batch padding).
    B2 = 29
    k1, k2 = jax.random.split(jax.random.PRNGKey(1))
    tl2 = jax.random.normal(k1, (B2, n_track, 2), jnp.float32)
    tr2 = jax.random.normal(k2, (B2, n_track, 2), jnp.float32)
    ref2 = _reference_forward(tl2, tr2, params, n_waypoints)
    out2 = mlp_planner_forward(tl2, tr2, params, n_waypoints, approx_recip=False)
    out2 = jax.block_until_ready(out2)
    assert out2.shape == (B2, n_waypoints, 2), out2.shape
    assert jnp.allclose(out2, ref2, atol=1e-4, rtol=1e-4), (
        "Pallas kernel (tiled grid) mismatch vs reference")

    print("KERNEL_OK")
</pallas_src>

<mosaic_0001>
module attributes {stable_mosaic.version = 11 : i64} {
  func.func @_mlp_planner_kernel(%arg0: i32, %arg1: memref<8x20xf32, #tpu.memory_space<vmem>>, %arg2: memref<8x20xf32, #tpu.memory_space<vmem>>, %arg3: memref<20x256xf32, #tpu.memory_space<vmem>>, %arg4: memref<20x256xf32, #tpu.memory_space<vmem>>, %arg5: memref<1x256xf32, #tpu.memory_space<vmem>>, %arg6: memref<256x128xf32, #tpu.memory_space<vmem>>, %arg7: memref<1x128xf32, #tpu.memory_space<vmem>>, %arg8: memref<128x8xf32, #tpu.memory_space<vmem>>, %arg9: memref<1x8xf32, #tpu.memory_space<vmem>>, %arg10: memref<8x8xf32, #tpu.memory_space<vmem>>) attributes {dimension_semantics = [#tpu.dimension_semantics<parallel>], iteration_bounds = array<i64: 1>, scalar_prefetch = 0 : i64, scratch_operands = 0 : i64, tpu.core_type = #tpu.core_type<tc>, window_params = [{transform_indices = @transform_0, window_bounds = array<i64: 8, 20>}, {transform_indices = @transform_1, window_bounds = array<i64: 8, 20>}, {pipeline_mode = #tpu.pipeline_mode<synchronous>, transform_indices = @transform_2, window_bounds = array<i64: 20, 256>}, {pipeline_mode = #tpu.pipeline_mode<synchronous>, transform_indices = @transform_3, window_bounds = array<i64: 20, 256>}, {pipeline_mode = #tpu.pipeline_mode<synchronous>, transform_indices = @transform_4, window_bounds = array<i64: 1, 256>}, {pipeline_mode = #tpu.pipeline_mode<synchronous>, transform_indices = @transform_5, window_bounds = array<i64: 256, 128>}, {pipeline_mode = #tpu.pipeline_mode<synchronous>, transform_indices = @transform_6, window_bounds = array<i64: 1, 128>}, {pipeline_mode = #tpu.pipeline_mode<synchronous>, transform_indices = @transform_7, window_bounds = array<i64: 128, 8>}, {pipeline_mode = #tpu.pipeline_mode<synchronous>, transform_indices = @transform_8, window_bounds = array<i64: 1, 8>}, {transform_indices = @transform_9, window_bounds = array<i64: 8, 8>}]} {
    %0 = tpu.iota {dimensions = array<i32: 1>} : vector<1x20xi32>
    %c2_i32 = arith.constant 2 : i32
    %c0_i32 = arith.constant 0 : i32
    %1 = arith.cmpi eq, %c2_i32, %c0_i32 : i32
    %c1_i32 = arith.constant 1 : i32
    %2 = arith.select %1, %c1_i32, %c2_i32 : i32
    %3 = vector.broadcast %2 : i32 to vector<1x20xi32>
    %4 = arith.remsi %0, %3 : vector<1x20xi32>
    %c0_i32_0 = arith.constant 0 : i32
    %5 = vector.broadcast %c0_i32_0 : i32 to vector<1x20xi32>
    %6 = arith.cmpi ne, %4, %5 : vector<1x20xi32>
    %c0_i32_1 = arith.constant 0 : i32
    %7 = vector.broadcast %c0_i32_1 : i32 to vector<1x20xi32>
    %8 = arith.cmpi slt, %4, %7 : vector<1x20xi32>
    %c0_i32_2 = arith.constant 0 : i32
    %9 = arith.cmpi slt, %2, %c0_i32_2 : i32
    %10 = vector.broadcast %9 : i1 to vector<1x20xi1>
    %11 = vector.broadcast %10 : vector<1x20xi1> to vector<1x20xi1>
    %12 = arith.xori %8, %11 : vector<1x20xi1>
    %13 = arith.andi %12, %6 : vector<1x20xi1>
    %14 = vector.broadcast %2 : i32 to vector<1x20xi32>
    %15 = arith.addi %4, %14 : vector<1x20xi32>
    %16 = arith.select %13, %15, %4 : vector<1x20xi1>, vector<1x20xi32>
    %c0_i32_3 = arith.constant 0 : i32
    %17 = vector.broadcast %c0_i32_3 : i32 to vector<1x20xi32>
    %18 = arith.cmpi eq, %16, %17 : vector<1x20xi32>
    %c0 = arith.constant 0 : index
    %c0_4 = arith.constant 0 : index
    %19 = vector.load %arg1[%c0, %c0_4] : memref<8x20xf32, #tpu.memory_space<vmem>>, vector<8x20xf32>
    %cst = arith.constant 0.000000e+00 : f32
    %20 = vector.shape_cast %18 : vector<1x20xi1> to vector<1x20xi1>
    %21 = vector.broadcast %20 : vector<1x20xi1> to vector<8x20xi1>
    %22 = vector.broadcast %cst : f32 to vector<8x20xf32>
    %23 = arith.select %21, %19, %22 : vector<8x20xi1>, vector<8x20xf32>
    %24 = arith.subf %19, %23 : vector<8x20xf32>
    %cst_5 = arith.constant dense<0.000000e+00> : vector<8xf32>
    %25 = vector.multi_reduction <add>, %23, %cst_5 [1] : vector<8x20xf32> to vector<8xf32>
    %26 = vector.shape_cast %25 : vector<8xf32> to vector<8x1xf32>
    %cst_6 = arith.constant 1.000000e-01 : f32
    %27 = vector.broadcast %cst_6 : f32 to vector<8x1xf32>
    %28 = arith.mulf %26, %27 : vector<8x1xf32>
    %cst_7 = arith.constant dense<0.000000e+00> : vector<8xf32>
    %29 = vector.multi_reduction <add>, %24, %cst_7 [1] : vector<8x20xf32> to vector<8xf32>
    %30 = vector.shape_cast %29 : vector<8xf32> to vector<8x1xf32>
    %cst_8 = arith.constant 1.000000e-01 : f32
    %31 = vector.broadcast %cst_8 : f32 to vector<8x1xf32>
    %32 = arith.mulf %30, %31 : vector<8x1xf32>
    %33 = vector.shape_cast %18 : vector<1x20xi1> to vector<1x20xi1>
    %34 = vector.broadcast %33 : vector<1x20xi1> to vector<8x20xi1>
    %35 = vector.shape_cast %28 : vector<8x1xf32> to vector<8x1xf32>
    %36 = vector.broadcast %35 : vector<8x1xf32> to vector<8x20xf32>
    %37 = vector.shape_cast %32 : vector<8x1xf32> to vector<8x1xf32>
    %38 = vector.broadcast %37 : vector<8x1xf32> to vector<8x20xf32>
    %39 = arith.select %34, %36, %38 : vector<8x20xi1>, vector<8x20xf32>
    %40 = arith.subf %19, %39 : vector<8x20xf32>
    %cst_9 = arith.constant 0.000000e+00 : f32
    %41 = vector.shape_cast %18 : vector<1x20xi1> to vector<1x20xi1>
    %42 = vector.broadcast %41 : vector<1x20xi1> to vector<8x20xi1>
    %43 = vector.broadcast %cst_9 : f32 to vector<8x20xf32>
    %44 = arith.select %42, %40, %43 : vector<8x20xi1>, vector<8x20xf32>
    %45 = arith.subf %40, %44 : vector<8x20xf32>
    %46 = arith.mulf %44, %44 : vector<8x20xf32>
    %cst_10 = arith.constant dense<0.000000e+00> : vector<8xf32>
    %47 = vector.multi_reduction <add>, %46, %cst_10 [1] : vector<8x20xf32> to vector<8xf32>
    %48 = vector.shape_cast %47 : vector<8xf32> to vector<8x1xf32>
    %cst_11 = arith.constant 0.111111112 : f32
    %49 = vector.broadcast %cst_11 : f32 to vector<8x1xf32>
    %50 = arith.mulf %48, %49 : vector<8x1xf32>
    %51 = math.sqrt %50 : vector<8x1xf32>
    %cst_12 = arith.constant 9.99999997E-7 : f32
    %52 = vector.broadcast %cst_12 : f32 to vector<8x1xf32>
    %53 = arith.addf %51, %52 : vector<8x1xf32>
    %54 = arith.mulf %45, %45 : vector<8x20xf32>
    %cst_13 = arith.constant dense<0.000000e+00> : vector<8xf32>
    %55 = vector.multi_reduction <add>, %54, %cst_13 [1] : vector<8x20xf32> to vector<8xf32>
    %56 = vector.shape_cast %55 : vector<8xf32> to vector<8x1xf32>
    %cst_14 = arith.constant 0.111111112 : f32
    %57 = vector.broadcast %cst_14 : f32 to vector<8x1xf32>
    %58 = arith.mulf %56, %57 : vector<8x1xf32>
    %59 = math.sqrt %58 : vector<8x1xf32>
    %cst_15 = arith.constant 9.99999997E-7 : f32
    %60 = vector.broadcast %cst_15 : f32 to vector<8x1xf32>
    %61 = arith.addf %59, %60 : vector<8x1xf32>
    %cst_16 = arith.constant 1.000000e+00 : f32
    %62 = vector.broadcast %cst_16 : f32 to vector<8x1xf32>
    %63 = arith.divf %62, %53 : vector<8x1xf32>
    %cst_17 = arith.constant 1.000000e+00 : f32
    %64 = vector.broadcast %cst_17 : f32 to vector<8x1xf32>
    %65 = arith.divf %64, %61 : vector<8x1xf32>
    %66 = vector.shape_cast %18 : vector<1x20xi1> to vector<1x20xi1>
    %67 = vector.broadcast %66 : vector<1x20xi1> to vector<8x20xi1>
    %68 = vector.shape_cast %63 : vector<8x1xf32> to vector<8x1xf32>
    %69 = vector.broadcast %68 : vector<8x1xf32> to vector<8x20xf32>
    %70 = vector.shape_cast %65 : vector<8x1xf32> to vector<8x1xf32>
    %71 = vector.broadcast %70 : vector<8x1xf32> to vector<8x20xf32>
    %72 = arith.select %67, %69, %71 : vector<8x20xi1>, vector<8x20xf32>
    %73 = arith.mulf %40, %72 : vector<8x20xf32>
    %c0_18 = arith.constant 0 : index
    %c0_19 = arith.constant 0 : index
    %74 = vector.load %arg2[%c0_18, %c0_19] : memref<8x20xf32, #tpu.memory_space<vmem>>, vector<8x20xf32>
    %cst_20 = arith.constant 0.000000e+00 : f32
    %75 = vector.shape_cast %18 : vector<1x20xi1> to vector<1x20xi1>
    %76 = vector.broadcast %75 : vector<1x20xi1> to vector<8x20xi1>
    %77 = vector.broadcast %cst_20 : f32 to vector<8x20xf32>
    %78 = arith.select %76, %74, %77 : vector<8x20xi1>, vector<8x20xf32>
    %79 = arith.subf %74, %78 : vector<8x20xf32>
    %cst_21 = arith.constant dense<0.000000e+00> : vector<8xf32>
    %80 = vector.multi_reduction <add>, %78, %cst_21 [1] : vector<8x20xf32> to vector<8xf32>
    %81 = vector.shape_cast %80 : vector<8xf32> to vector<8x1xf32>
    %cst_22 = arith.constant 1.000000e-01 : f32
    %82 = vector.broadcast %cst_22 : f32 to vector<8x1xf32>
    %83 = arith.mulf %81, %82 : vector<8x1xf32>
    %cst_23 = arith.constant dense<0.000000e+00> : vector<8xf32>
    %84 = vector.multi_reduction <add>, %79, %cst_23 [1] : vector<8x20xf32> to vector<8xf32>
    %85 = vector.shape_cast %84 : vector<8xf32> to vector<8x1xf32>
    %cst_24 = arith.constant 1.000000e-01 : f32
    %86 = vector.broadcast %cst_24 : f32 to vector<8x1xf32>
    %87 = arith.mulf %85, %86 : vector<8x1xf32>
    %88 = vector.shape_cast %18 : vector<1x20xi1> to vector<1x20xi1>
    %89 = vector.broadcast %88 : vector<1x20xi1> to vector<8x20xi1>
    %90 = vector.shape_cast %83 : vector<8x1xf32> to vector<8x1xf32>
    %91 = vector.broadcast %90 : vector<8x1xf32> to vector<8x20xf32>
    %92 = vector.shape_cast %87 : vector<8x1xf32> to vector<8x1xf32>
    %93 = vector.broadcast %92 : vector<8x1xf32> to vector<8x20xf32>
    %94 = arith.select %89, %91, %93 : vector<8x20xi1>, vector<8x20xf32>
    %95 = arith.subf %74, %94 : vector<8x20xf32>
    %cst_25 = arith.constant 0.000000e+00 : f32
    %96 = vector.shape_cast %18 : vector<1x20xi1> to vector<1x20xi1>
    %97 = vector.broadcast %96 : vector<1x20xi1> to vector<8x20xi1>
    %98 = vector.broadcast %cst_25 : f32 to vector<8x20xf32>
    %99 = arith.select %97, %95, %98 : vector<8x20xi1>, vector<8x20xf32>
    %100 = arith.subf %95, %99 : vector<8x20xf32>
    %101 = arith.mulf %99, %99 : vector<8x20xf32>
    %cst_26 = arith.constant dense<0.000000e+00> : vector<8xf32>
    %102 = vector.multi_reduction <add>, %101, %cst_26 [1] : vector<8x20xf32> to vector<8xf32>
    %103 = vector.shape_cast %102 : vector<8xf32> to vector<8x1xf32>
    %cst_27 = arith.constant 0.111111112 : f32
    %104 = vector.broadcast %cst_27 : f32 to vector<8x1xf32>
    %105 = arith.mulf %103, %104 : vector<8x1xf32>
    %106 = math.sqrt %105 : vector<8x1xf32>
    %cst_28 = arith.constant 9.99999997E-7 : f32
    %107 = vector.broadcast %cst_28 : f32 to vector<8x1xf32>
    %108 = arith.addf %106, %107 : vector<8x1xf32>
    %109 = arith.mulf %100, %100 : vector<8x20xf32>
    %cst_29 = arith.constant dense<0.000000e+00> : vector<8xf32>
    %110 = vector.multi_reduction <add>, %109, %cst_29 [1] : vector<8x20xf32> to vector<8xf32>
    %111 = vector.shape_cast %110 : vector<8xf32> to vector<8x1xf32>
    %cst_30 = arith.constant 0.111111112 : f32
    %112 = vector.broadcast %cst_30 : f32 to vector<8x1xf32>
    %113 = arith.mulf %111, %112 : vector<8x1xf32>
    %114 = math.sqrt %113 : vector<8x1xf32>
    %cst_31 = arith.constant 9.99999997E-7 : f32
    %115 = vector.broadcast %cst_31 : f32 to vector<8x1xf32>
    %116 = arith.addf %114, %115 : vector<8x1xf32>
    %cst_32 = arith.constant 1.000000e+00 : f32
    %117 = vector.broadcast %cst_32 : f32 to vector<8x1xf32>
    %118 = arith.divf %117, %108 : vector<8x1xf32>
    %cst_33 = arith.constant 1.000000e+00 : f32
    %119 = vector.broadcast %cst_33 : f32 to vector<8x1xf32>
    %120 = arith.divf %119, %116 : vector<8x1xf32>
    %121 = vector.shape_cast %18 : vector<1x20xi1> to vector<1x20xi1>
    %122 = vector.broadcast %121 : vector<1x20xi1> to vector<8x20xi1>
    %123 = vector.shape_cast %118 : vector<8x1xf32> to vector<8x1xf32>
    %124 = vector.broadcast %123 : vector<8x1xf32> to vector<8x20xf32>
    %125 = vector.shape_cast %120 : vector<8x1xf32> to vector<8x1xf32>
    %126 = vector.broadcast %125 : vector<8x1xf32> to vector<8x20xf32>
    %127 = arith.select %122, %124, %126 : vector<8x20xi1>, vector<8x20xf32>
    %128 = arith.mulf %95, %127 : vector<8x20xf32>
    %c0_34 = arith.constant 0 : index
    %c0_35 = arith.constant 0 : index
    %129 = vector.load %arg3[%c0_34, %c0_35] : memref<20x256xf32, #tpu.memory_space<vmem>>, vector<20x256xf32>
    %cst_36 = arith.constant dense<0.000000e+00> : vector<8x256xf32>
    %130 = tpu.matmul %73, %129, %cst_36 {dimension_numbers = #tpu.dot_dimension_numbers<[1], [0], [0], [1], [0, 0, 1, 1], [], []>} : vector<8x20xf32>, vector<20x256xf32>, vector<8x256xf32> -> vector<8x256xf32>
    %c0_37 = arith.constant 0 : index
    %c0_38 = arith.constant 0 : index
    %131 = vector.load %arg4[%c0_37, %c0_38] : memref<20x256xf32, #tpu.memory_space<vmem>>, vector<20x256xf32>
    %cst_39 = arith.constant dense<0.000000e+00> : vector<8x256xf32>
    %132 = tpu.matmul %128, %131, %cst_39 {dimension_numbers = #tpu.dot_dimension_numbers<[1], [0], [0], [1], [0, 0, 1, 1], [], []>} : vector<8x20xf32>, vector<20x256xf32>, vector<8x256xf32> -> vector<8x256xf32>
    %133 = arith.addf %130, %132 : vector<8x256xf32>
    %c0_40 = arith.constant 0 : index
    %c0_41 = arith.constant 0 : index
    %134 = vector.load %arg5[%c0_40, %c0_41] : memref<1x256xf32, #tpu.memory_space<vmem>>, vector<1x256xf32>
    %135 = vector.broadcast %134 : vector<1x256xf32> to vector<8x256xf32>
    %136 = arith.addf %133, %135 : vector<8x256xf32>
    %cst_42 = arith.constant 0.000000e+00 : f32
    %137 = vector.broadcast %cst_42 : f32 to vector<8x256xf32>
    %138 = arith.maximumf %136, %137 : vector<8x256xf32>
    %c0_43 = arith.constant 0 : index
    %c0_44 = arith.constant 0 : index
    %139 = vector.load %arg6[%c0_43, %c0_44] : memref<256x128xf32, #tpu.memory_space<vmem>>, vector<256x128xf32>
    %cst_45 = arith.constant dense<0.000000e+00> : vector<8x128xf32>
    %140 = tpu.matmul %138, %139, %cst_45 {dimension_numbers = #tpu.dot_dimension_numbers<[1], [0], [0], [1], [0, 0, 1, 1], [], []>} : vector<8x256xf32>, vector<256x128xf32>, vector<8x128xf32> -> vector<8x128xf32>
    %c0_46 = arith.constant 0 : index
    %c0_47 = arith.constant 0 : index
    %141 = vector.load %arg7[%c0_46, %c0_47] : memref<1x128xf32, #tpu.memory_space<vmem>>, vector<1x128xf32>
    %142 = vector.broadcast %141 : vector<1x128xf32> to vector<8x128xf32>
    %143 = arith.addf %140, %142 : vector<8x128xf32>
    %cst_48 = arith.constant 0.000000e+00 : f32
    %144 = vector.broadcast %cst_48 : f32 to vector<8x128xf32>
    %145 = arith.maximumf %143, %144 : vector<8x128xf32>
    %c0_49 = arith.constant 0 : index
    %c0_50 = arith.constant 0 : index
    %146 = vector.load %arg8[%c0_49, %c0_50] : memref<128x8xf32, #tpu.memory_space<vmem>>, vector<128x8xf32>
    %cst_51 = arith.constant dense<0.000000e+00> : vector<8x8xf32>
    %147 = tpu.matmul %145, %146, %cst_51 {dimension_numbers = #tpu.dot_dimension_numbers<[1], [0], [0], [1], [0, 0, 1, 1], [], []>} : vector<8x128xf32>, vector<128x8xf32>, vector<8x8xf32> -> vector<8x8xf32>
    %c0_52 = arith.constant 0 : index
    %c0_53 = arith.constant 0 : index
    %148 = vector.load %arg9[%c0_52, %c0_53] : memref<1x8xf32, #tpu.memory_space<vmem>>, vector<1x8xf32>
    %149 = vector.broadcast %148 : vector<1x8xf32> to vector<8x8xf32>
    %150 = arith.addf %147, %149 : vector<8x8xf32>
    %c0_54 = arith.constant 0 : index
    %c0_55 = arith.constant 0 : index
    %151 = vector.load %arg10[%c0_54, %c0_55] : memref<8x8xf32, #tpu.memory_space<vmem>>, vector<8x8xf32>
    tpu.vector_store %arg10[%c0_54, %c0_55], %150 {strides = array<i32>} : memref<8x8xf32, #tpu.memory_space<vmem>>, vector<8x8xf32>,
    return
  }
  func.func @transform_0(%arg0: i32) -> (i32, i32) {
    %c0_i32 = arith.constant 0 : i32
    %c0_i32_0 = arith.constant 0 : i32
    return %arg0, %c0_i32 : i32, i32
  }
  func.func @transform_1(%arg0: i32) -> (i32, i32) {
    %c0_i32 = arith.constant 0 : i32
    %c0_i32_0 = arith.constant 0 : i32
    return %arg0, %c0_i32 : i32, i32
  }
  func.func @transform_2(%arg0: i32) -> (i32, i32) {
    %c0_i32 = arith.constant 0 : i32
    %c0_i32_0 = arith.constant 0 : i32
    %c0_i32_1 = arith.constant 0 : i32
    return %c0_i32, %c0_i32_0 : i32, i32
  }
  func.func @transform_3(%arg0: i32) -> (i32, i32) {
    %c0_i32 = arith.constant 0 : i32
    %c0_i32_0 = arith.constant 0 : i32
    %c0_i32_1 = arith.constant 0 : i32
    return %c0_i32, %c0_i32_0 : i32, i32
  }
  func.func @transform_4(%arg0: i32) -> (i32, i32) {
    %c0_i32 = arith.constant 0 : i32
    %c0_i32_0 = arith.constant 0 : i32
    %c0_i32_1 = arith.constant 0 : i32
    return %c0_i32, %c0_i32_0 : i32, i32
  }
  func.func @transform_5(%arg0: i32) -> (i32, i32) {
    %c0_i32 = arith.constant 0 : i32
    %c0_i32_0 = arith.constant 0 : i32
    %c0_i32_1 = arith.constant 0 : i32
    return %c0_i32, %c0_i32_0 : i32, i32
  }
  func.func @transform_6(%arg0: i32) -> (i32, i32) {
    %c0_i32 = arith.constant 0 : i32
    %c0_i32_0 = arith.constant 0 : i32
    %c0_i32_1 = arith.constant 0 : i32
    return %c0_i32, %c0_i32_0 : i32, i32
  }
  func.func @transform_7(%arg0: i32) -> (i32, i32) {
    %c0_i32 = arith.constant 0 : i32
    %c0_i32_0 = arith.constant 0 : i32
    %c0_i32_1 = arith.constant 0 : i32
    return %c0_i32, %c0_i32_0 : i32, i32
  }
  func.func @transform_8(%arg0: i32) -> (i32, i32) {
    %c0_i32 = arith.constant 0 : i32
    %c0_i32_0 = arith.constant 0 : i32
    %c0_i32_1 = arith.constant 0 : i32
    return %c0_i32, %c0_i32_0 : i32, i32
  }
  func.func @transform_9(%arg0: i32) -> (i32, i32) {
    %c0_i32 = arith.constant 0 : i32
    %c0_i32_0 = arith.constant 0 : i32
    return %arg0, %c0_i32 : i32, i32
  }
}

</mosaic_0001>

<bundles_post_ra>
// kernel: tpu_custom_call.1
= control target key start
LH: loop header
LB: loop body
LE: loop exit
PB: predicated region body
PF: predicated region fallthrough
CT: control target
= control target key end

     0   :  { %14 = vsyncpa [#allocation3], 0  ;;  %s951_s0 = inlined_call_operand.vmem [shape: f32[8,20], index: 0, kind: input, shape index: {}]   ;;  %s952_s1 = inlined_call_operand.vmem [shape: f32[8,20], index: 1, kind: input, shape index: {}]   ;;  %s953_s2 = inlined_call_operand.vmem [shape: f32[20,256], index: 2, kind: input, shape index: {}]   ;;  %s954_s3 = inlined_call_operand.vmem [shape: f32[20,256], index: 3, kind: input, shape index: {}]   ;;  %s955_s4 = inlined_call_operand.vmem [shape: f32[1,256], index: 4, kind: input, shape index: {}]   ;;  %s956_s5 = inlined_call_operand.hbm [shape: f32[256,128], index: 5, kind: input, shape index: {}]   ;;  %s957_s6 = inlined_call_operand.vmem [shape: f32[1,128], index: 6, kind: input, shape index: {}]   ;;  %s958_s7 = inlined_call_operand.vmem [shape: f32[128,8], index: 7, kind: input, shape index: {}]   ;;  %s959_s8 = inlined_call_operand.vmem [shape: f32[1,8], index: 8, kind: input, shape index: {}]   ;;  %s960_s9 = inlined_call_operand.hbm [shape: f32[8,8], index: 9, kind: output, shape index: {}]  }
   0x1   :  { %15 = vsyncpa [#allocation4], 0  ;;  %s729_s30 = smov [#allocation2]  }
   0x2   :  { %s31_s10 = sshll.u32 %s729_s30, 4  ;;  %s32_s10 = int_to_ptr.vmem [resolvable:$true] %s31_s10 }
   0x3   :  { %s693_s11 = scalar_lea.vmem %s32_s10, 4096  ;;  %p698_p1 = scmp.lt.s32.totalorder %s32_s10, %s32_s10 }
   0x4   :  { %p694_p0 = scmp.ne.s32.totalorder %s32_s10, %s693_s11  ;;  %p699_p2 = scmp.lt.s32.totalorder %s693_s11, %s693_s11 }
   0x6   :  { %p700_p3 = por %p699_p2, %p698_p1 }
   0x8   :  { %p701_p4 = pnand %p700_p3, %p694_p0 }
   0xa   :  { %704 = shalt.err (!%p701_p4)
}
   0xb   :  { %s730_s12 = smov 128   ;;  %s731_s13 = smov 8  }
   0xc   :  { %37 = dma.hbm_to_vmem [thread:$0]  %s956_s5, 4096, %s32_s10, [#allocation3], %s730_s12, %s730_s12, %s731_s13  }
   0xd   :  { %725 = dma.done.wait [#allocation3], 4096  }
   0xe   :  { %726 = vsyncadd [#allocation3], 4294963200  ;;  %v47_v0 = vlaneseq  ;;  %vm67_vm1 = vcmask 162816   ;;  %v112_v4 = vld [vmem:[%s952_s1] sm:$0xff]  ;;  %v164_v38 = vld [vmem:[%s953_s2 + $0x28] sm:$0xf] }
   0xf   :  { %v62_v5 = vld [vmem:[%s951_s0] sm:$0xff]  ;;  %vm174_vm2 = vcmask 1043456   ;;  %v162_v40 = vld [vmem:[%s953_s2 + $0x18] sm:$0xff]  ;;  %v161_v41 = vld [vmem:[%s953_s2 + $0x10] sm:$0xff]  ;;  %v732_v47 = vmov 0.0   ;;  %vm733_vm11 = vmmov 0  }
  0x10   :  { %v48_v1 = vand.u32 127, %v47_v0  ;;  %v163_v39 = vld [vmem:[%s953_s2 + $0x20] sm:$0xf]  ;;  %571 = vmatprep.subr.msk.mxu1 %vm174_vm2, %v164_v38  ;;  %v170_v42 = vld [vmem:[%s954_s3 + $0x28] sm:$0xf]  ;;  %v168_v45 = vld [vmem:[%s954_s3 + $0x18] sm:$0xff]  ;;  %325 = vmatprep.mubr.f32.mxu1 %v732_v47 }
  0x11   :  { %572 = vmatpush1.msk.msra.mxu1 %vm174_vm2, %v163_v39  ;;  %568 = vmatprep.subr.msk.mxu0 %vm174_vm2, %v170_v42  ;;  %v160_v43 = vld [vmem:[%s953_s2 + $0x8] sm:$0xff]  ;;  %v169_v44 = vld [vmem:[%s954_s3 + $0x20] sm:$0xf]  ;;  %v167_v48 = vld [vmem:[%s954_s3 + $0x10] sm:$0xff]  ;;  %s734_s26 = smov [#allocation5]   ;;  %vm551_vm12 = vcmask 64512  }
  0x12   :  { %v53_v2 = vand.u32 1, %v48_v1  ;;  %289 = vmatprep.subr.mxu1 %v162_v40  ;;  %569 = vmatpush1.msk.msra.mxu0 %vm174_vm2, %v169_v44  ;;  %v159_v46 = vld [vmem:[%s953_s2] sm:$0xff]  ;;  %v166_v49 = vld [vmem:[%s954_s3 + $0x8] sm:$0xff]  ;;  %v379_v51 = vld [vmem:[#allocation2 + $0xf8] sm:$0xff] }
  0x13   :  { %290 = vmatpush1.msra.mxu1 %v161_v41  ;;  %209 = vmatprep.subr.mxu0 %v168_v45  ;;  %v165_v50 = vld [vmem:[%s954_s3] sm:$0xff]  ;;  %v375_v38 = vld [vmem:[#allocation2 + $0xd8] sm:$0xff]  ;;  %v374_v39 = vld [vmem:[#allocation2 + $0xd0] sm:$0xff] }
  0x14   :  { %vm789_vm0 = vcmp.eq.s32.totalorder %v53_v2, 0  ;;  %291 = vmatprep.subr.mxu1 %v160_v43  ;;  %245 = vmatprep.mubr.f32.mxu0 %v732_v47  ;;  %v359_v3 = vld [vmem:[#allocation2 + $0x58] sm:$0xff]  ;;  %v373_v40 = vld [vmem:[#allocation2 + $0xc8] sm:$0xff]  ;;  %v372_v42 = vld [vmem:[#allocation2 + $0xc0] sm:$0xff] }
  0x15   :  { %v113_v6 = vsel %vm789_vm0, %v112_v4, 0.0  ;;  %v65_v7 = vsel %vm789_vm0, %v62_v5, 0.0  ;;  %292 = vmatpush1.msra.mxu1 %v159_v46  ;;  %210 = vmatpush1.msra.mxu0 %v167_v48  ;;  %v357_v41 = vld [vmem:[#allocation2 + $0x48] sm:$0xff]  ;;  %v356_v43 = vld [vmem:[#allocation2 + $0x40] sm:$0xff]  ;;  %v371_v44 = vld [vmem:[#allocation2 + $0xb8] sm:$0xff] }
  0x16   :  { %v115_v8 = vsel %vm67_vm1, %v113_v6, 0.0  ;;  %v114_v9 = vsub.f32 %v112_v4, %v113_v6  ;;  %v68_v10 = vsel %vm67_vm1, %v65_v7, 0.0  ;;  %v66_v11 = vsub.f32 %v62_v5, %v65_v7  ;;  %628 = vmatprep.subr.mxu1 %v732_v47  ;;  %211 = vmatprep.subr.mxu0 %v166_v49  ;;  %v355_v45 = vld [vmem:[#allocation2 + $0x38] sm:$0xff]  ;;  %v370_v46 = vld [vmem:[#allocation2 + $0xb0] sm:$0xff]  ;;  %v369_v49 = vld [vmem:[#allocation2 + $0xa8] sm:$0xff] }
  0x17   :  { %116 = vadd.xlane.f32.xlu1 %v115_v8  ;;  %69 = vadd.xlane.f32.xlu0 %v68_v10  ;;  %v354_v48 = vld [vmem:[#allocation2 + $0x30] sm:$0xff] }
  0x18   :  { %v119_v12 = vsel %vm67_vm1, %v114_v9, 0.0  ;;  %v72_v13 = vsel %vm67_vm1, %v66_v11, 0.0  ;;  %212 = vmatpush1.msra.mxu0 %v165_v50  ;;  %v353_v50 = vld [vmem:[#allocation2 + $0x28] sm:$0xff] }
  0x19   :  { %576 = vmatprep.subr.mxu0 %v379_v51  ;;  %v368_v51 = vld [vmem:[#allocation2 + $0xa0] sm:$0xff] }
  0x1b   :  { %120 = vadd.xlane.f32.xlu1 %v119_v12  ;;  %73 = vadd.xlane.f32.xlu0 %v72_v13 }
  0xa0   :  { %v117_v14 = vpop.xlane.xlu1 %116  ;;  %v70_v15 = vpop.xlane.xlu0 %69 }
  0xa1   :  { %v118_v16 = vmul.f32 0.1, %v117_v14  ;;  %v71_v19 = vmul.f32 0.1, %v70_v15 }
  0xa4   :  { %v121_v17 = vpop.xlane.xlu1 %120  ;;  %v74_v18 = vpop.xlane.xlu0 %73 }
  0xa5   :  { %v122_v20 = vmul.f32 0.1, %v121_v17  ;;  %v75_v21 = vmul.f32 0.1, %v74_v18 }
  0xa7   :  { %v123_v22 = vsel %vm789_vm0, %v118_v16, %v122_v20  ;;  %v76_v23 = vsel %vm789_vm0, %v71_v19, %v75_v21 }
  0xa8   :  { %v811_v24 = vsub.f32 %v112_v4, %v123_v22  ;;  %v813_v25 = vsub.f32 %v62_v5, %v76_v23 }
  0xaa   :  { %v78_v26 = vsel %vm789_vm0, %v813_v25, 0.0  ;;  %v125_v27 = vsel %vm789_vm0, %v811_v24, 0.0 }
  0xab   :  { %v80_v28 = vmul.f32 %v78_v26, %v78_v26  ;;  %v79_v29 = vsub.f32 %v813_v25, %v78_v26  ;;  %v126_v30 = vsub.f32 %v811_v24, %v125_v27  ;;  %v127_v33 = vmul.f32 %v125_v27, %v125_v27 }
  0xad   :  { %v81_v31 = vsel %vm67_vm1, %v80_v28, 0.0  ;;  %v93_v32 = vmul.f32 %v79_v29, %v79_v29  ;;  %v140_v35 = vmul.f32 %v126_v30, %v126_v30  ;;  %v128_v36 = vsel %vm67_vm1, %v127_v33, 0.0  ;;  %v378_v33 = vld [vmem:[#allocation2 + $0xf0] sm:$0xff] }
  0xae   :  { %82 = vadd.xlane.f32.xlu0 %v81_v31 }
  0xaf   :  { %v94_v34 = vsel %vm67_vm1, %v93_v32, 0.0  ;;  %v141_v37 = vsel %vm67_vm1, %v140_v35, 0.0  ;;  %v363_v32 = vld [vmem:[#allocation2 + $0x78] sm:$0xff]  ;;  %v377_v35 = vld [vmem:[#allocation2 + $0xe8] sm:$0xff] }
  0xb0   :  { %95 = vadd.xlane.f32.xlu1 %v94_v34  ;;  %v362_v34 = vld [vmem:[#allocation2 + $0x70] sm:$0xff] }
  0xb2   :  { %129 = vadd.xlane.f32.xlu0 %v128_v36  ;;  %v361_v36 = vld [vmem:[#allocation2 + $0x68] sm:$0xff] }
  0xb4   :  { %142 = vadd.xlane.f32.xlu1 %v141_v37  ;;  %v360_v37 = vld [vmem:[#allocation2 + $0x60] sm:$0xff] }
 0x137   :  { %v83_v52 = vpop.xlane.xlu0 %82 }
 0x138   :  { %v84_v53 = vmul.f32 0.11111111, %v83_v52  ;;  %v352_v52 = vld [vmem:[#allocation2 + $0x20] sm:$0xff] }
 0x139   :  { %v96_v54 = vpop.xlane.xlu1 %95 }
 0x13a   :  { %669 = vrsqrt.f32 %v84_v53  ;;  %v97_v55 = vmul.f32 0.11111111, %v96_v54  ;;  %vm87_vm3 = vcmp.eq.f32.partialorder %v84_v53, inf  ;;  %v90_v62 = vand.u32 2147483648, %v84_v53  ;;  %v351_v54 = vld [vmem:[#allocation2 + $0x18] sm:$0xff] }
 0x13b   :  { %v130_v56 = vpop.xlane.xlu0 %129  ;;  %vm89_vm4 = vcmp.eq.f32.partialorder %v84_v53, 0.0 }
 0x13c   :  { %v131_v57 = vmul.f32 0.11111111, %v130_v56  ;;  %671 = vrsqrt.f32 %v97_v55  ;;  %vm100_vm5 = vcmp.eq.f32.partialorder %v97_v55, inf  ;;  %v103_v7 = vand.u32 2147483648, %v97_v55  ;;  %v350_v56 = vld [vmem:[#allocation2 + $0x10] sm:$0xff] }
 0x13d   :  { %v143_v58 = vpop.xlane.xlu1 %142  ;;  %vm102_vm6 = vcmp.eq.f32.partialorder %v97_v55, 0.0 }
 0x13e   :  { %673 = vrsqrt.f32 %v131_v57  ;;  %v144_v59 = vmul.f32 0.11111111, %v143_v58  ;;  %vm134_vm7 = vcmp.eq.f32.partialorder %v131_v57, inf  ;;  %v137_v10 = vand.u32 2147483648, %v131_v57  ;;  %v349_v58 = vld [vmem:[#allocation2 + $0x8] sm:$0xff] }
 0x13f   :  { %vm136_vm8 = vcmp.eq.f32.partialorder %v131_v57, 0.0 }
 0x140   :  { %675 = vrsqrt.f32 %v144_v59  ;;  %vm147_vm9 = vcmp.eq.f32.partialorder %v144_v59, inf  ;;  %v150_v18 = vand.u32 2147483648, %v144_v59  ;;  %vm149_vm10 = vcmp.eq.f32.partialorder %v144_v59, 0.0 }
 0x147   :  { %v670_v60 = vpop.eup %669 }
 0x148   :  { %v86_v61 = vmul.f32 %v670_v60, %v84_v53  ;;  %v348_v60 = vld [vmem:[#allocation2] sm:$0xff] }
 0x149   :  { %v672_v63 = vpop.eup %671 }
 0x14a   :  { %v88_v1 = vsel %vm87_vm3, %v84_v53, %v86_v61  ;;  %v99_v5 = vmul.f32 %v672_v63, %v97_v55  ;;  %v367_v53 = vld [vmem:[#allocation2 + $0x98] sm:$0xff]  ;;  %v471_v63 = vld [vmem:[%s958_s7 + $0x68] sm:$0xff] }
 0x14b   :  { %v674_v2 = vpop.eup %673  ;;  %v91_v4 = vsel %vm89_vm4, %v90_v62, %v88_v1  ;;  %v473_v61 = vld [vmem:[%s958_s7 + $0x78] sm:$0xff]  ;;  %v472_v62 = vld [vmem:[%s958_s7 + $0x70] sm:$0xff]  ;;  %v470_v1 = vld [vmem:[%s958_s7 + $0x60] sm:$0xff] }
 0x14c   :  { %v92_v6 = vadd.f32 1e-06, %v91_v4  ;;  %v133_v8 = vmul.f32 %v674_v2, %v131_v57  ;;  %v101_v9 = vsel %vm100_vm5, %v97_v55, %v99_v5  ;;  %v366_v55 = vld [vmem:[#allocation2 + $0x90] sm:$0xff]  ;;  %v469_v2 = vld [vmem:[%s958_s7 + $0x58] sm:$0xff]  ;;  %v467_v5 = vld [vmem:[%s958_s7 + $0x48] sm:$0xff] }
 0x14d   :  { %v676_v11 = vpop.eup %675  ;;  %v104_v12 = vsel %vm102_vm6, %v103_v7, %v101_v9  ;;  %v468_v4 = vld [vmem:[%s958_s7 + $0x50] sm:$0xff]  ;;  %v465_v7 = vld [vmem:[%s958_s7 + $0x38] sm:$0xff]  ;;  %v463_v9 = vld [vmem:[%s958_s7 + $0x28] sm:$0xff] }
 0x14e   :  { %v135_v13 = vsel %vm134_vm7, %v131_v57, %v133_v8  ;;  %v105_v14 = vadd.f32 1e-06, %v104_v12  ;;  %v146_v16 = vmul.f32 %v676_v11, %v144_v59  ;;  %677 = vrcp.f32 %v92_v6  ;;  %v365_v57 = vld [vmem:[#allocation2 + $0x88] sm:$0xff]  ;;  %v466_v6 = vld [vmem:[%s958_s7 + $0x40] sm:$0xff]  ;;  %v464_v8 = vld [vmem:[%s958_s7 + $0x30] sm:$0xff] }
 0x14f   :  { %v138_v15 = vsel %vm136_vm8, %v137_v10, %v135_v13  ;;  %v335_v10 = vshrl.u32 %v47_v0, 7  ;;  %v332_v12 = vld [vmem:[%s955_s4] sm:$0x3] }
 0x150   :  { %v139_v17 = vadd.f32 1e-06, %v138_v15  ;;  %679 = vrcp.f32 %v105_v14  ;;  %v148_v19 = vsel %vm147_vm9, %v144_v59, %v146_v16  ;;  %v364_v59 = vld [vmem:[#allocation2 + $0x80] sm:$0xff] }
 0x151   :  { %v151_v20 = vsel %vm149_vm10, %v150_v18, %v148_v19  ;;  %v336_v11 = vsub.s32 0, %v335_v10  ;;  %v340_v13 = vsub.s32 1, %v335_v10  ;;  %v462_v0 = vld [vmem:[%s958_s7 + $0x20] sm:$0xff] }
 0x152   :  { %v152_v21 = vadd.f32 1e-06, %v151_v20  ;;  %681 = vrcp.f32 %v139_v17 }
 0x153   :  { %v337_v16 = vrot.slane %v332_v12, %v336_v11  ;;  %v341_v18 = vrot.slane %v332_v12, %v340_v13 }
 0x154   :  { %683 = vrcp.f32 %v152_v21 }
 0x15b   :  { %v678_v22 = vpop.eup %677 }
 0x15d   :  { %v680_v23 = vpop.eup %679 }
 0x15e   :  { %v110_v26 = vsel %vm789_vm0, %v678_v22, %v680_v23 }
 0x15f   :  { %v111_v27 = vmul.f32 %v110_v26, %v813_v25  ;;  %v682_v28 = vpop.eup %681  ;;  %v376_v25 = vld [vmem:[#allocation2 + $0xe0] sm:$0xff] }
 0x161   :  { %v684_v29 = vpop.eup %683  ;;  %573 = vmatmul.mubr.msk.f32.vlgmr.msra.gmra.mxu1 %vm67_vm1, %v111_v27 }
 0x162   :  { %v157_v30 = vsel %vm789_vm0, %v682_v28, %v684_v29  ;;  %629 = vmatpush3.msra.mxu1 %v473_v61  ;;  %v461_v28 = vld [vmem:[%s958_s7 + $0x18] sm:$0xff]  ;;  %v460_v29 = vld [vmem:[%s958_s7 + $0x10] sm:$0xff]  ;;  %660 = vmatprep.mubr.msk.f32.mxu1 %vm733_vm11, %v732_v47 }
 0x163   :  { %v158_v31 = vmul.f32 %v157_v30, %v811_v24  ;;  %v358_v24 = vld [vmem:[#allocation2 + $0x50] sm:$0xff]  ;;  %630 = vmatprep.subr.mxu1 %v732_v47  ;;  %v459_v30 = vld [vmem:[%s958_s7 + $0x8] sm:$0xff] }
 0x164   :  { %631 = vmatpush3.msra.mxu1 %v472_v62 }
 0x165   :  { %570 = vmatmul.mubr.msk.f32.vlgmr.msra.gmra.mxu0 %vm67_vm1, %v158_v31  ;;  %632 = vmatprep.subr.mxu1 %v732_v47  ;;  %v458_v31 = vld [vmem:[%s958_s7] sm:$0xff]  ;;  %s559_s7 = sshll.u32 %s734_s26, 4  ;;  %s560_s7 = int_to_ptr.vmem [resolvable:$true] %s559_s7 }
 0x166   :  { %577 = vmatpush3.msra.mxu0 %v363_v32  ;;  %633 = vmatpush3.msra.mxu1 %v471_v63  ;;  %s705_s27 = scalar_lea.vmem %s560_s7, 128  ;;  %p710_p6 = scmp.lt.s32.totalorder %s560_s7, %s560_s7 }
 0x167   :  { %578 = vmatprep.subr.mxu0 %v378_v33  ;;  %634 = vmatprep.subr.mxu1 %v732_v47  ;;  %v574_v33 = vld [vmem:[%s957_s6] ss:$0 sm:$0xff]  ;;  %p706_p5 = scmp.ne.s32.totalorder %s560_s7, %s705_s27  ;;  %p711_p7 = scmp.lt.s32.totalorder %s705_s27, %s705_s27 }
 0x168   :  { %579 = vmatpush3.msra.mxu0 %v362_v34  ;;  %635 = vmatpush3.msra.mxu1 %v470_v1 }
 0x169   :  { %580 = vmatprep.subr.mxu0 %v377_v35  ;;  %636 = vmatprep.subr.mxu1 %v732_v47  ;;  %p712_p8 = por %p711_p7, %p710_p6 }
 0x16a   :  { %581 = vmatpush3.msra.mxu0 %v361_v36  ;;  %637 = vmatpush3.msra.mxu1 %v469_v2 }
 0x16b   :  { %582 = vmatprep.subr.mxu0 %v376_v25  ;;  %638 = vmatprep.subr.mxu1 %v732_v47  ;;  %p713_p9 = pnand %p712_p8, %p706_p5 }
 0x16c   :  { %583 = vmatpush3.msra.mxu0 %v360_v37  ;;  %639 = vmatpush3.msra.mxu1 %v468_v4  ;;  %v575_v37 = vld [vmem:[%s959_s8] ss:$0 sm:$0xff] }
 0x16d   :  { %584 = vmatprep.subr.mxu0 %v375_v38  ;;  %640 = vmatprep.subr.mxu1 %v732_v47 }
 0x16e   :  { %585 = vmatpush3.msra.mxu0 %v359_v3  ;;  %641 = vmatpush3.msra.mxu1 %v467_v5 }
 0x16f   :  { %586 = vmatprep.subr.mxu0 %v374_v39  ;;  %642 = vmatprep.subr.mxu1 %v732_v47 }
 0x170   :  { %587 = vmatpush3.msra.mxu0 %v358_v24  ;;  %643 = vmatpush3.msra.mxu1 %v466_v6 }
 0x171   :  { %588 = vmatprep.subr.mxu0 %v373_v40  ;;  %644 = vmatprep.subr.mxu1 %v732_v47 }
 0x172   :  { %589 = vmatpush3.msra.mxu0 %v357_v41  ;;  %645 = vmatpush3.msra.mxu1 %v465_v7 }
 0x173   :  { %590 = vmatprep.subr.mxu0 %v372_v42  ;;  %646 = vmatprep.subr.mxu1 %v732_v47 }
 0x174   :  { %591 = vmatpush3.msra.mxu0 %v356_v43  ;;  %647 = vmatpush3.msra.mxu1 %v464_v8 }
 0x175   :  { %592 = vmatprep.subr.mxu0 %v371_v44  ;;  %648 = vmatprep.subr.mxu1 %v732_v47 }
 0x176   :  { %593 = vmatpush3.msra.mxu0 %v355_v45  ;;  %649 = vmatpush3.msra.mxu1 %v463_v9 }
 0x177   :  { %594 = vmatprep.subr.mxu0 %v370_v46  ;;  %650 = vmatprep.subr.mxu1 %v732_v47 }
 0x178   :  { %595 = vmatpush3.msra.mxu0 %v354_v48  ;;  %651 = vmatpush3.msra.mxu1 %v462_v0 }
 0x179   :  { %596 = vmatprep.subr.mxu0 %v369_v49  ;;  %652 = vmatprep.subr.mxu1 %v732_v47 }
 0x17a   :  { %597 = vmatpush3.msra.mxu0 %v353_v50  ;;  %653 = vmatpush3.msra.mxu1 %v461_v28 }
 0x17b   :  { %598 = vmatprep.subr.mxu0 %v368_v51  ;;  %654 = vmatprep.subr.mxu1 %v732_v47 }
 0x17c   :  { %599 = vmatpush3.msra.mxu0 %v352_v52  ;;  %655 = vmatpush3.msra.mxu1 %v460_v29 }
 0x17d   :  { %600 = vmatprep.subr.mxu0 %v367_v53  ;;  %656 = vmatprep.subr.mxu1 %v732_v47 }
 0x17e   :  { %601 = vmatpush3.msra.mxu0 %v351_v54  ;;  %657 = vmatpush3.msra.mxu1 %v459_v30 }
 0x17f   :  { %602 = vmatprep.subr.mxu0 %v366_v55  ;;  %658 = vmatprep.subr.mxu1 %v732_v47 }
 0x180   :  { %603 = vmatpush3.msra.mxu0 %v350_v56  ;;  %659 = vmatpush3.msra.mxu1 %v458_v31 }
 0x181   :  { %604 = vmatprep.subr.mxu0 %v365_v57 }
 0x182   :  { %605 = vmatpush3.msra.mxu0 %v349_v58 }
 0x183   :  { %606 = vmatprep.subr.mxu0 %v364_v59 }
 0x184   :  { %607 = vmatpush3.msra.mxu0 %v348_v60 }
 0x221   :  { %v327_v14 = vpop.f32.mrf.mxu1 }
 0x223   :  { %v329_v19 = vpop.f32.mrf.mxu1 }
 0x225   :  { %v247_v15 = vpop.f32.mrf.mxu0 }
 0x226   :  { %v328_v17 = vadd.f32 %v327_v14, %v247_v15 }
 0x227   :  { %v249_v20 = vpop.f32.mrf.mxu0 }
 0x228   :  { %v330_v21 = vadd.f32 %v329_v19, %v249_v20  ;;  %v344_v22 = vadd.f32 %v337_v16, %v328_v17 }
 0x22a   :  { %v345_v23 = vadd.f32 %v341_v18, %v330_v21  ;;  %v346_v27 = vmax.f32 %v344_v22, 0.0 }
 0x22c   :  { %v347_v26 = vmax.f32 %v345_v23, 0.0 }
 0x22e   :  { %451 = vmatprep.mubr.f32.mxu0 %v347_v26 }
 0x22f   :  { %452 = vmatmul.mubr.f32.vlgmr.msra.gmra.mxu0 %v346_v27 }
 0x2ef   :  { %v608_v32 = vpop.f32.mrf.mxu0 }
 0x2f1   :  { %v609_v34 = vpop.f32.mrf.mxu0 }
 0x2f2   :  { %v610_v35 = vadd.f32 %v609_v34, %v608_v32 }
 0x2f4   :  { %v454_v36 = vadd.f32 %v610_v35, %v574_v33 }
 0x2f6   :  { %v457_v25 = vmax.f32 %v454_v36, 0.0 }
 0x2f8   :  { %661 = vmatmul.mubr.f32.vlgmr.msra.gmra.mxu1 %v457_v25 }
 0x3b8   :  { %v547_v38 = vpop.f32.mrf.mxu1 }
 0x3b9   :  { %v548_v3 = vadd.f32 %v575_v37, %v547_v38 }
 0x3ba   :  { %v662_v47 = vpop.f32.mrf.mxu1 }
 0x3bb   :  { %552 = vst.msk [vmem:[#allocation5] sm:$0xff] %vm551_vm12, %v548_v3 }
 0x3bc   :  { %716 = shalt.err (!%p713_p9)
}
 0x3bd   :  { %562 = dma.vmem_to_hbm [thread:$0]  %s560_s7, 128, %s960_s9, [#allocation4]  }
 0x3be   :  { %727 = dma.done.wait [#allocation4], 128  }
 0x3bf   :  { %728 = vsyncadd [#allocation4], 4294967168 }
 0x3c0   :  { %566 = vsyncpa [#allocation3], 1 }
 0x3c1   :  { %567 = vsyncpa [#allocation4], 1 }

</bundles_post_ra>
